<compile_context>
chip_gen: v5e
topology: v5e:2x2
jax: 0.10.0
libtpu: 0.0.40
codegen_flags: <defaults>
</compile_context>

<pallas_src>
import functools

import jax
import jax.numpy as jnp
from jax.experimental import pallas as pl
from jax.experimental.pallas import tpu as pltpu

# ---- module hyper-parameters (match EncodeAtom.__init__ semantics) ----------
NUM_ATOM_TYPE    = 7          # ft[:, 0:7] used as one-hot floats directly
HYB_TYPES_NUM    = 3
HYB_EMBED_DIM    = 8
BINARY_FEATURES  = 7          # columns [7, 8, 13, 14, 15, 16, 17]
BINARY_EMBED_DIM = 4
SCALAR_FEATURES  = 3          # columns [10, 11, 12]
OUT_DIM          = 32
FT_COLS          = 18

ATOM_ONEHOT_COLS = tuple(range(7))
BINARY_COLS      = (7, 8, 13, 14, 15, 16, 17)
HYB_COL          = 9
SCALAR_COLS      = (10, 11, 12)

INPUT_DIM = (NUM_ATOM_TYPE + HYB_EMBED_DIM
             + BINARY_EMBED_DIM * BINARY_FEATURES + SCALAR_FEATURES)   # 46

LANE = 128
VMEM_LIMIT_BYTES = 48 * 1024 * 1024   # > v5e's 16 MiB default scoped, < v7x's 64 MiB


def _round_up(x, m):
    return (x + m - 1) // m * m


def _encode_atom_kernel(ft_ref, w_ref, d1_ref, d2_ref, b_ref, o_ref):
    """Row-major body: out(TN,32) = ft @ W_eff + hyb*d1 + 0.5*hyb*(hyb-1)*d2 + b."""
    ft = ft_ref[...]                                                   # (TN, 18) f32

    # Hybridization index: float->int32 truncation matches the reference .long().
    hyb = ft[:, HYB_COL:HYB_COL + 1].astype(jnp.int32).astype(jnp.float32)   # (TN, 1)

    # Single accumulating MXU dot (column HYB_COL of W_eff is zero).
    acc = jnp.dot(ft, w_ref[...], preferred_element_type=jnp.float32)        # (TN, 32)

    # Lagrange-quadratic hyb embedding (exact for hyb in {0,1,2}); h_eff[0] is
    # already folded into the bias.
    hyb_q = (0.5 * hyb) * (hyb - 1.0)                                         # (TN, 1)
    o_ref[...] = acc + hyb * d1_ref[...] + hyb_q * d2_ref[...] + b_ref[...]


@functools.partial(jax.jit, static_argnames=("tile_n",))
def encode_atom(ft, hyb_table, bin_table, w, b, *, tile_n=8192):
    """ft (N,18) f32; hyb_table (3,8); bin_table (2,4); w (46,32)=torch weight.T; b (1,32)."""
    n = ft.shape[0]

    # ---- fold the embedding tables into an effective weight / bias (tiny, trace-time) ---
    w = w.astype(jnp.float32)
    w_atom = w[0:NUM_ATOM_TYPE]                                        # (7, 32)
    w_hyb  = w[NUM_ATOM_TYPE:NUM_ATOM_TYPE + HYB_EMBED_DIM]            # (8, 32)
    w_bin  = w[15:15 + BINARY_FEATURES * BINARY_EMBED_DIM].reshape(
        BINARY_FEATURES, BINARY_EMBED_DIM, OUT_DIM)                    # (7, 4, 32)
    w_scal = w[15 + BINARY_FEATURES * BINARY_EMBED_DIM:INPUT_DIM]      # (3, 32)

    # Hybridization embedding folded through the linear: h_eff[k] = hyb_table[k] @ w_hyb.
    h_eff = hyb_table.astype(jnp.float32) @ w_hyb                      # (3, 32)
    d1 = (h_eff[1] - h_eff[0]).reshape(1, OUT_DIM)                     # linear term
    d2 = (h_eff[2] - 2.0 * h_eff[1] + h_eff[0]).reshape(1, OUT_DIM)    # quadratic term

    # Binary embedding is affine in the 0/1 flag: row0 + flag*(row1-row0).
    bin0 = bin_table[0].astype(jnp.float32)                            # (4,)
    bin_diff = bin_table[1].astype(jnp.float32) - bin0                 # (4,)
    diff_cols = jnp.einsum("e,jeo->jo", bin_diff, w_bin)               # (7, 32)
    base_bias = jnp.einsum("e,jeo->o", bin0, w_bin)                    # (32,)

    b_eff = (b.reshape(1, OUT_DIM).astype(jnp.float32)
             + base_bias[None, :] + h_eff[0][None, :])                 # (1, 32)

    w_eff = jnp.zeros((FT_COLS, OUT_DIM), jnp.float32)
    w_eff = w_eff.at[jnp.array(ATOM_ONEHOT_COLS)].set(w_atom)
    w_eff = w_eff.at[jnp.array(BINARY_COLS)].set(diff_cols)
    w_eff = w_eff.at[jnp.array(SCALAR_COLS)].set(w_scal)
    # column HYB_COL stays zero: its contribution is carried via d1/d2/bias.

    # ---- row-major tiling: no transpose, no pad, ragged last block clipped ---
    tile = max(LANE, min(_round_up(tile_n, LANE), _round_up(n, LANE)))
    grid = (pl.cdiv(n, tile),)

    out = pl.pallas_call(
        _encode_atom_kernel,
        out_shape=jax.ShapeDtypeStruct((n, OUT_DIM), jnp.float32),
        grid=grid,
        in_specs=[
            pl.BlockSpec((tile, FT_COLS), lambda i: (i, 0)),           # natural ft tile
            pl.BlockSpec((FT_COLS, OUT_DIM), lambda i: (0, 0)),        # resident W_eff
            pl.BlockSpec((1, OUT_DIM), lambda i: (0, 0)),              # resident d1
            pl.BlockSpec((1, OUT_DIM), lambda i: (0, 0)),              # resident d2
            pl.BlockSpec((1, OUT_DIM), lambda i: (0, 0)),              # resident bias
        ],
        out_specs=pl.BlockSpec((tile, OUT_DIM), lambda i: (i, 0)),     # natural output tile
        compiler_params=pltpu.CompilerParams(
            dimension_semantics=("parallel",),                         # megacore-shardable
            vmem_limit_bytes=VMEM_LIMIT_BYTES),
    )(ft.astype(jnp.float32), w_eff, d1, d2, b_eff)

    return out                                                         # (N, 32)


def encode_atom_reference(ft, hyb_table, bin_table, w, b):
    """Pure-JAX reference mirroring the PyTorch forward."""
    atom = ft[:, list(ATOM_ONEHOT_COLS)].astype(jnp.float32)
    hyb = ft[:, HYB_COL].astype(jnp.int32)
    hyb_emb = hyb_table[hyb]
    flags = ft[:, list(BINARY_COLS)].astype(jnp.int32)
    bin_emb = bin_table[flags].reshape(ft.shape[0], -1)
    scal = ft[:, list(SCALAR_COLS)].astype(jnp.float32)
    x = jnp.concatenate([atom, hyb_emb, bin_emb, scal], axis=-1)
    return x @ w + b


if __name__ == "__main__":
    key = jax.random.PRNGKey(0)
    k_tab1, k_tab2, k_w, k_b, k_data = jax.random.split(key, 5)

    # Deterministic parameter init (synthetic; no checkpoint load).
    hyb_table = jax.random.normal(k_tab1, (HYB_TYPES_NUM, HYB_EMBED_DIM), dtype=jnp.float32)
    bin_table = jax.random.normal(k_tab2, (2, BINARY_EMBED_DIM), dtype=jnp.float32)
    w = (jax.random.normal(k_w, (INPUT_DIM, OUT_DIM), dtype=jnp.float32)
         / jnp.sqrt(jnp.float32(INPUT_DIM)))
    b = jax.random.normal(k_b, (1, OUT_DIM), dtype=jnp.float32) * 0.01

    def make_ft(k, n):
        k_atom, k_hyb, k_bin, k_scal = jax.random.split(k, 4)
        atom_idx = jax.random.randint(k_atom, (n,), 0, NUM_ATOM_TYPE)
        atom_onehot = jax.nn.one_hot(atom_idx, NUM_ATOM_TYPE, dtype=jnp.float32)
        hyb_idx = jax.random.randint(k_hyb, (n,), 0, HYB_TYPES_NUM).astype(jnp.float32)
        flags = jax.random.randint(k_bin, (n, BINARY_FEATURES), 0, 2).astype(jnp.float32)
        scal = jax.random.normal(k_scal, (n, SCALAR_FEATURES), dtype=jnp.float32)
        ft = jnp.zeros((n, FT_COLS), jnp.float32)
        ft = ft.at[:, 0:NUM_ATOM_TYPE].set(atom_onehot)
        ft = ft.at[:, HYB_COL].set(hyb_idx)
        ft = ft.at[:, jnp.array(BINARY_COLS)].set(flags)
        ft = ft.at[:, jnp.array(SCALAR_COLS)].set(scal)
        return ft

    ok = True
    # (128, big-tile): single full block; (300, big-tile): single ragged block;
    # (300, tile_n=128): multi-step grid with a ragged last block.
    for n, tile_n in ((128, 8192), (300, 8192), (300, 128)):
        ft = make_ft(jax.random.fold_in(k_data, n * 10 + tile_n), n)
        out = jax.block_until_ready(
            encode_atom(ft, hyb_table, bin_table, w, b, tile_n=tile_n))
        ref = encode_atom_reference(ft, hyb_table, bin_table, w, b)
        ok = ok and (out.shape == (n, OUT_DIM))
        ok = ok and bool(jnp.allclose(out, ref, atol=1e-4, rtol=1e-4))
    assert ok, "mismatch vs reference"
    print("KERNEL_OK")
</pallas_src>

<mosaic_0001>
module attributes {stable_mosaic.version = 11 : i64} {
  func.func @_encode_atom_kernel(%arg0: i32, %arg1: memref<128x18xf32, #tpu.memory_space<vmem>>, %arg2: memref<18x32xf32, #tpu.memory_space<vmem>>, %arg3: memref<1x32xf32, #tpu.memory_space<vmem>>, %arg4: memref<1x32xf32, #tpu.memory_space<vmem>>, %arg5: memref<1x32xf32, #tpu.memory_space<vmem>>, %arg6: memref<128x32xf32, #tpu.memory_space<vmem>>) attributes {dimension_semantics = [#tpu.dimension_semantics<parallel>], iteration_bounds = array<i64: 1>, scalar_prefetch = 0 : i64, scratch_operands = 0 : i64, tpu.core_type = #tpu.core_type<tc>, window_params = [{transform_indices = @transform_0, window_bounds = array<i64: 128, 18>}, {pipeline_mode = #tpu.pipeline_mode<synchronous>, transform_indices = @transform_1, window_bounds = array<i64: 18, 32>}, {pipeline_mode = #tpu.pipeline_mode<synchronous>, transform_indices = @transform_2, window_bounds = array<i64: 1, 32>}, {pipeline_mode = #tpu.pipeline_mode<synchronous>, transform_indices = @transform_3, window_bounds = array<i64: 1, 32>}, {pipeline_mode = #tpu.pipeline_mode<synchronous>, transform_indices = @transform_4, window_bounds = array<i64: 1, 32>}, {transform_indices = @transform_5, window_bounds = array<i64: 128, 32>}]} {
    %c0 = arith.constant 0 : index
    %c0_0 = arith.constant 0 : index
    %0 = vector.load %arg1[%c0, %c0_0] : memref<128x18xf32, #tpu.memory_space<vmem>>, vector<128x18xf32>
    %1 = vector.extract_strided_slice %0 {offsets = [0, 9], sizes = [128, 1], strides = [1, 1]} : vector<128x18xf32> to vector<128x1xf32>
    %2 = arith.fptosi %1 : vector<128x1xf32> to vector<128x1xi32>
    %3 = arith.sitofp %2 : vector<128x1xi32> to vector<128x1xf32>
    %c0_1 = arith.constant 0 : index
    %c0_2 = arith.constant 0 : index
    %4 = vector.load %arg2[%c0_1, %c0_2] : memref<18x32xf32, #tpu.memory_space<vmem>>, vector<18x32xf32>
    %cst = arith.constant dense<0.000000e+00> : vector<128x32xf32>
    %5 = tpu.matmul %0, %4, %cst {dimension_numbers = #tpu.dot_dimension_numbers<[1], [0], [0], [1], [0, 0, 1, 1], [], []>} : vector<128x18xf32>, vector<18x32xf32>, vector<128x32xf32> -> vector<128x32xf32>
    %cst_3 = arith.constant 5.000000e-01 : f32
    %6 = vector.broadcast %cst_3 : f32 to vector<128x1xf32>
    %7 = arith.mulf %6, %3 : vector<128x1xf32>
    %cst_4 = arith.constant 1.000000e+00 : f32
    %8 = vector.broadcast %cst_4 : f32 to vector<128x1xf32>
    %9 = arith.subf %3, %8 : vector<128x1xf32>
    %10 = arith.mulf %7, %9 : vector<128x1xf32>
    %c0_5 = arith.constant 0 : index
    %c0_6 = arith.constant 0 : index
    %11 = vector.load %arg3[%c0_5, %c0_6] : memref<1x32xf32, #tpu.memory_space<vmem>>, vector<1x32xf32>
    %12 = vector.broadcast %3 : vector<128x1xf32> to vector<128x32xf32>
    %13 = vector.broadcast %11 : vector<1x32xf32> to vector<128x32xf32>
    %14 = arith.mulf %12, %13 : vector<128x32xf32>
    %15 = arith.addf %5, %14 : vector<128x32xf32>
    %c0_7 = arith.constant 0 : index
    %c0_8 = arith.constant 0 : index
    %16 = vector.load %arg4[%c0_7, %c0_8] : memref<1x32xf32, #tpu.memory_space<vmem>>, vector<1x32xf32>
    %17 = vector.broadcast %10 : vector<128x1xf32> to vector<128x32xf32>
    %18 = vector.broadcast %16 : vector<1x32xf32> to vector<128x32xf32>
    %19 = arith.mulf %17, %18 : vector<128x32xf32>
    %20 = arith.addf %15, %19 : vector<128x32xf32>
    %c0_9 = arith.constant 0 : index
    %c0_10 = arith.constant 0 : index
    %21 = vector.load %arg5[%c0_9, %c0_10] : memref<1x32xf32, #tpu.memory_space<vmem>>, vector<1x32xf32>
    %22 = vector.broadcast %21 : vector<1x32xf32> to vector<128x32xf32>
    %23 = arith.addf %20, %22 : vector<128x32xf32>
    %c0_11 = arith.constant 0 : index
    %c0_12 = arith.constant 0 : index
    %24 = vector.load %arg6[%c0_11, %c0_12] : memref<128x32xf32, #tpu.memory_space<vmem>>, vector<128x32xf32>
    tpu.vector_store %arg6[%c0_11, %c0_12], %23 {strides = array<i32>} : memref<128x32xf32, #tpu.memory_space<vmem>>, vector<128x32xf32>,
    return
  }
  func.func @transform_0(%arg0: i32) -> (i32, i32) {
    %c0_i32 = arith.constant 0 : i32
    %c0_i32_0 = arith.constant 0 : i32
    return %arg0, %c0_i32 : i32, i32
  }
  func.func @transform_1(%arg0: i32) -> (i32, i32) {
    %c0_i32 = arith.constant 0 : i32
    %c0_i32_0 = arith.constant 0 : i32
    %c0_i32_1 = arith.constant 0 : i32
    return %c0_i32, %c0_i32_0 : i32, i32
  }
  func.func @transform_2(%arg0: i32) -> (i32, i32) {
    %c0_i32 = arith.constant 0 : i32
    %c0_i32_0 = arith.constant 0 : i32
    %c0_i32_1 = arith.constant 0 : i32
    return %c0_i32, %c0_i32_0 : i32, i32
  }
  func.func @transform_3(%arg0: i32) -> (i32, i32) {
    %c0_i32 = arith.constant 0 : i32
    %c0_i32_0 = arith.constant 0 : i32
    %c0_i32_1 = arith.constant 0 : i32
    return %c0_i32, %c0_i32_0 : i32, i32
  }
  func.func @transform_4(%arg0: i32) -> (i32, i32) {
    %c0_i32 = arith.constant 0 : i32
    %c0_i32_0 = arith.constant 0 : i32
    %c0_i32_1 = arith.constant 0 : i32
    return %c0_i32, %c0_i32_0 : i32, i32
  }
  func.func @transform_5(%arg0: i32) -> (i32, i32) {
    %c0_i32 = arith.constant 0 : i32
    %c0_i32_0 = arith.constant 0 : i32
    return %arg0, %c0_i32 : i32, i32
  }
}

</mosaic_0001>

<bundles_post_ra>
// kernel: encode_atom.1
= control target key start
LH: loop header
LB: loop body
LE: loop exit
PB: predicated region body
PF: predicated region fallthrough
CT: control target
= control target key end

     0   :  { %vm268_vm0 = vcmask 1041408   ;;  %v623_v2 = vmov 9   ;;  %vm219_vm1 = vcmask 146432   ;;  %s990_s1 = inlined_call_operand.vmem [shape: f32[18,32], index: 1, kind: input, shape index: {}]   ;;  %s991_s0 = inlined_call_operand.vmem [shape: f32[128,18], index: 0, kind: input, shape index: {}]   ;;  %s992_s2 = inlined_call_operand.vmem [shape: f32[1,32], index: 2, kind: input, shape index: {}]   ;;  %s993_s3 = inlined_call_operand.vmem [shape: f32[1,32], index: 3, kind: input, shape index: {}]   ;;  %s994_s4 = inlined_call_operand.vmem [shape: f32[1,32], index: 4, kind: input, shape index: {}]   ;;  %s995_s5 = inlined_call_operand.vmem [shape: f32[128,32], index: 5, kind: output, shape index: {}]  }
   0x1   :  { %v70_v0 = vld [vmem:[%s990_s1 + $0x10] sm:$0x3]  ;;  %v69_v1 = vld [vmem:[%s990_s1 + $0x8] sm:$0xff]  ;;  %619 = vset.pattern.permute.xlu2 %v623_v2  ;;  %618 = vset.pattern.permute.xlu1 %v623_v2  ;;  %v20_v3 = vld [vmem:[%s991_s0] sm:$0xff] }
   0x2   :  { %510 = vmatpush.msk.msra.mxu0 %vm268_vm0, %v70_v0  ;;  %527 = vmatpush.msk.msra.mxu1 %vm268_vm0, %v70_v0  ;;  %v24_v4 = vld [vmem:[%s991_s0 + $0x20] sm:$0xff]  ;;  %v537_v6 = vceil.f32 %v20_v3  ;;  %v538_v7 = vfloor.f32 %v20_v3  ;;  %v672_v10 = vld [vmem:[%s991_s0 + $0x10] sm:$0xff]  ;;  %v677_v11 = vld [vmem:[%s991_s0 + $0x8] sm:$0xff]  ;;  %vm536_vm4 = vcmp.lt.s32.totalorder %v20_v3, 0 }
   0x3   :  { %528 = vmatpush.msk.msra.mxu2 %vm268_vm0, %v70_v0  ;;  %529 = vmatpush.msk.msra.mxu3 %vm268_vm0, %v70_v0  ;;  %v68_v5 = vld [vmem:[%s990_s1] sm:$0xff]  ;;  %v557_v8 = vceil.f32 %v24_v4  ;;  %v558_v9 = vfloor.f32 %v24_v4  ;;  %v682_v12 = vld [vmem:[%s991_s0 + $0x28] sm:$0xff]  ;;  %vm556_vm2 = vcmp.lt.s32.totalorder %v24_v4, 0  ;;  %vm546_vm3 = vcmp.lt.s32.totalorder %v672_v10, 0  ;;  %v700_v23 = vld [vmem:[%s991_s0 + $0x18] sm:$0xff] }
   0x4   :  { %286 = vmatpush.msra.mxu0 %v69_v1  ;;  %530 = vmatpush.msra.mxu1 %v69_v1  ;;  %v547_v13 = vceil.f32 %v672_v10  ;;  %v548_v14 = vfloor.f32 %v672_v10  ;;  %v28_v15 = vld [vmem:[%s991_s0 + $0x40] sm:$0xff]  ;;  %v542_v18 = vceil.f32 %v677_v11  ;;  %v539_v21 = vsel %vm536_vm4, %v537_v6, %v538_v7  ;;  %v26_v31 = vld [vmem:[%s991_s0 + $0x30] sm:$0xff]  ;;  %v729_v39 = vld [vmem:[%s991_s0 + $0x38] sm:$0xff] }
   0x5   :  { %531 = vmatpush.msra.mxu2 %v69_v1  ;;  %532 = vmatpush.msra.mxu3 %v69_v1  ;;  %v693_v16 = vld [vmem:[%s991_s0 + $0x60] sm:$0xff]  ;;  %v559_v17 = vsel %vm556_vm2, %v557_v8, %v558_v9  ;;  %v562_v22 = vceil.f32 %v682_v12  ;;  %v540_v25 = vcvt.f32.s32 %v539_v21  ;;  %v543_v26 = vfloor.f32 %v677_v11  ;;  %v29_v44 = vld [vmem:[%s991_s0 + $0x48] sm:$0xff]  ;;  %v31_v54 = vld [vmem:[%s991_s0 + $0x58] sm:$0xff] }
   0x6   :  { %287 = vmatpush.msra.mxu0 %v68_v5  ;;  %533 = vmatpush.msra.mxu1 %v68_v5  ;;  %v560_v19 = vcvt.f32.s32 %v559_v17  ;;  %v549_v20 = vsel %vm546_vm3, %v547_v13, %v548_v14  ;;  %v563_v27 = vfloor.f32 %v682_v12  ;;  %vm561_vm5 = vcmp.lt.s32.totalorder %v682_v12, 0  ;;  %v737_v45 = vld [vmem:[%s991_s0 + $0x68] sm:$0xff]  ;;  %v30_v58 = vld [vmem:[%s991_s0 + $0x50] sm:$0xff] }
   0x7   :  { %534 = vmatpush.msra.mxu2 %v68_v5  ;;  %535 = vmatpush.msra.mxu3 %v68_v5  ;;  %v550_v24 = vcvt.f32.s32 %v549_v20  ;;  %v713_v30 = vcvt.s32.f32 %v540_v25  ;;  %vm551_vm6 = vcmp.lt.s32.totalorder %v700_v23, 0  ;;  %v552_v33 = vceil.f32 %v700_v23 }
   0x8   :  { %511 = vmatmul.msk.f32.vlgmr.msra.gmra.mxu0 %vm219_vm1, %v20_v3  ;;  %515 = vmatmul.msk.f32.vlgmr.msra.gmra.mxu1 %vm219_vm1, %v24_v4  ;;  %v709_v28 = vcvt.s32.f32 %v560_v19  ;;  %v564_v32 = vsel %vm561_vm5, %v562_v22, %v563_v27  ;;  %v553_v34 = vfloor.f32 %v700_v23  ;;  %vm541_vm7 = vcmp.lt.s32.totalorder %v677_v11, 0  ;;  %v35_v19 = vld [vmem:[%s991_s0 + $0x78] sm:$0xff] }
   0x9   :  { %519 = vmatmul.msk.f32.vlgmr.msra.gmra.mxu2 %vm219_vm1, %v28_v15  ;;  %523 = vmatmul.msk.f32.vlgmr.msra.gmra.mxu3 %vm219_vm1, %v693_v16  ;;  %v711_v29 = vcvt.s32.f32 %v550_v24  ;;  %v577_v35 = vceil.f32 %v28_v15  ;;  %v578_v36 = vfloor.f32 %v28_v15  ;;  %v565_v37 = vcvt.f32.s32 %v564_v32 }
   0xa   :  { %617 = vset.pattern.permute.xlu0 %v623_v2  ;;  %142 = vperm.xlu2 %619, %v709_v28   ;;  %v544_v38 = vsel %vm541_vm7, %v542_v18, %v543_v26  ;;  %v554_v40 = vsel %vm551_vm6, %v552_v33, %v553_v34  ;;  %v567_v42 = vceil.f32 %v26_v31  ;;  %v568_v43 = vfloor.f32 %v26_v31  ;;  %v34_v2 = vld [vmem:[%s991_s0 + $0x70] sm:$0xff] }
   0xb   :  { %132 = vperm.xlu1 %618, %v711_v29   ;;  %122 = vperm.xlu0 %617, %v713_v30   ;;  %v545_v41 = vcvt.f32.s32 %v544_v38  ;;  %v739_v46 = vcvt.s32.f32 %v565_v37  ;;  %v555_v47 = vcvt.f32.s32 %v554_v40  ;;  %vm576_vm8 = vcmp.lt.s32.totalorder %v28_v15, 0 }
   0xc   :  { %vm571_vm9 = vcmp.lt.s32.totalorder %v729_v39, 0  ;;  %v572_v49 = vceil.f32 %v729_v39  ;;  %v579_v51 = vsel %vm576_vm8, %v577_v35, %v578_v36  ;;  %v573_v52 = vfloor.f32 %v729_v39 }
   0xd   :  { %v741_v48 = vcvt.s32.f32 %v545_v41  ;;  %v749_v50 = vcvt.s32.f32 %v555_v47  ;;  %vm566_vm10 = vcmp.lt.s32.totalorder %v26_v31, 0  ;;  %v582_v56 = vceil.f32 %v29_v44 }
   0xe   :  { %v569_v53 = vsel %vm566_vm10, %v567_v42, %v568_v43  ;;  %v574_v55 = vsel %vm571_vm9, %v572_v49, %v573_v52  ;;  %v580_v57 = vcvt.f32.s32 %v579_v51  ;;  %v592_v61 = vceil.f32 %v31_v54 }
   0xf   :  { %v575_v59 = vcvt.f32.s32 %v574_v55  ;;  %v570_v60 = vcvt.f32.s32 %v569_v53  ;;  %v593_v62 = vfloor.f32 %v31_v54  ;;  %v583_v63 = vfloor.f32 %v29_v44 }
  0x10   :  { %512 = vmatmul.msk.f32.gmra.mxu0 %vm219_vm1, %v677_v11  ;;  %516 = vmatmul.msk.f32.gmra.mxu1 %vm219_vm1, %v682_v12  ;;  %v587_v0 = vceil.f32 %v30_v58  ;;  %v588_v1 = vfloor.f32 %v30_v58  ;;  %vm591_vm11 = vcmp.lt.s32.totalorder %v31_v54, 0  ;;  %vm586_vm12 = vcmp.lt.s32.totalorder %v30_v58, 0 }
  0x11   :  { %520 = vmatmul.msk.f32.gmra.mxu2 %vm219_vm1, %v29_v44  ;;  %524 = vmatmul.msk.f32.gmra.mxu3 %vm219_vm1, %v737_v45  ;;  %vm581_vm13 = vcmp.lt.s32.totalorder %v29_v44, 0  ;;  %v767_v3 = vcvt.s32.f32 %v580_v57  ;;  %v772_v4 = vcvt.s32.f32 %v575_v59  ;;  %v774_v5 = vcvt.s32.f32 %v570_v60 }
  0x12   :  { %147 = vperm.xlu2 %619, %v739_v46   ;;  %v594_v6 = vsel %vm591_vm11, %v592_v61, %v593_v62  ;;  %v589_v7 = vsel %vm586_vm12, %v587_v0, %v588_v1  ;;  %v584_v8 = vsel %vm581_vm13, %v582_v56, %v583_v63  ;;  %v597_v9 = vceil.f32 %v693_v16 }
  0x13   :  { %137 = vperm.xlu1 %618, %v749_v50   ;;  %127 = vperm.xlu0 %617, %v741_v48   ;;  %v595_v11 = vcvt.f32.s32 %v594_v6  ;;  %v607_v12 = vceil.f32 %v34_v2  ;;  %v590_v13 = vcvt.f32.s32 %v589_v7  ;;  %v585_v14 = vcvt.f32.s32 %v584_v8 }
  0x14   :  { %v598_v15 = vfloor.f32 %v693_v16  ;;  %v602_v17 = vceil.f32 %v737_v45  ;;  %v603_v18 = vfloor.f32 %v737_v45  ;;  %vm606_vm14 = vcmp.lt.s32.totalorder %v34_v2, 0 }
  0x15   :  { %vm601_vm15 = vcmp.lt.s32.totalorder %v737_v45, 0  ;;  %vm596_vm0 = vcmp.lt.s32.totalorder %v693_v16, 0  ;;  %v790_v20 = vcvt.s32.f32 %v595_v11  ;;  %v62_v21 = vcvt.s32.f32 %v590_v13 }
  0x16   :  { %v61_v22 = vcvt.s32.f32 %v585_v14  ;;  %v604_v25 = vsel %vm601_vm15, %v602_v17, %v603_v18  ;;  %v599_v26 = vsel %vm596_vm0, %v597_v9, %v598_v15  ;;  %v613_v32 = vfloor.f32 %v35_v19 }
  0x17   :  { %v605_v27 = vcvt.f32.s32 %v604_v25  ;;  %vm611_vm2 = vcmp.lt.s32.totalorder %v35_v19, 0  ;;  %v72_v37 = vmul.f32 0.5, %v741_v48  ;;  %v495_v38 = vadd.f32 -1.0, %v741_v48 }
  0x18   :  { %513 = vmatmul.msk.f32.gmra.mxu0 %vm219_vm1, %v672_v10  ;;  %517 = vmatmul.msk.f32.gmra.mxu1 %vm219_vm1, %v26_v31  ;;  %v608_v10 = vfloor.f32 %v34_v2  ;;  %v600_v31 = vcvt.f32.s32 %v599_v26  ;;  %v71_v40 = vmul.f32 0.5, %v713_v30  ;;  %v494_v41 = vadd.f32 -1.0, %v713_v30 }
  0x19   :  { %521 = vmatmul.msk.f32.gmra.mxu2 %vm219_vm1, %v30_v58  ;;  %525 = vmatmul.msk.f32.gmra.mxu3 %vm219_vm1, %v34_v2  ;;  %v65_v34 = vcvt.s32.f32 %v605_v27  ;;  %v104_v42 = vmul.f32 %v495_v38, %v72_v37  ;;  %v75_v45 = vmul.f32 0.5, %v709_v28  ;;  %v498_v47 = vadd.f32 -1.0, %v709_v28 }
  0x1a   :  { %162 = vperm.xlu2 %619, %v767_v3   ;;  %v609_v24 = vsel %vm606_vm14, %v607_v12, %v608_v10  ;;  %v64_v35 = vcvt.s32.f32 %v600_v31  ;;  %v103_v44 = vmul.f32 %v494_v41, %v71_v40  ;;  %v73_v49 = vmul.f32 0.5, %v711_v29 }
  0x1b   :  { %157 = vperm.xlu1 %618, %v772_v4   ;;  %152 = vperm.xlu0 %617, %v774_v5   ;;  %v610_v16 = vcvt.f32.s32 %v609_v24  ;;  %v496_v48 = vadd.f32 -1.0, %v711_v29  ;;  %v74_v51 = vmul.f32 0.5, %v749_v50  ;;  %v497_v52 = vadd.f32 -1.0, %v749_v50 }
  0x1c   :  { %v107_v53 = vmul.f32 %v498_v47, %v75_v45  ;;  %v78_v55 = vmul.f32 0.5, %v772_v4  ;;  %v501_v56 = vadd.f32 -1.0, %v772_v4  ;;  %v76_v28 = vmul.f32 0.5, %v739_v46 }
  0x1d   :  { %v799_v33 = vcvt.s32.f32 %v610_v16  ;;  %v105_v30 = vmul.f32 %v496_v48, %v73_v49  ;;  %v499_v57 = vadd.f32 -1.0, %v739_v46  ;;  %v77_v29 = vmul.f32 0.5, %v774_v5 }
  0x1e   :  { %v500_v58 = vadd.f32 -1.0, %v774_v5  ;;  %v110_v59 = vmul.f32 %v501_v56, %v78_v55  ;;  %v81_v61 = vmul.f32 0.5, %v62_v21  ;;  %v504_v62 = vadd.f32 -1.0, %v62_v21 }
  0x1f   :  { %v108_v50 = vmul.f32 %v499_v57, %v76_v28  ;;  %v79_v63 = vmul.f32 0.5, %v767_v3  ;;  %v502_v0 = vadd.f32 -1.0, %v767_v3  ;;  %v80_v1 = vmul.f32 0.5, %v61_v22 }
  0x20   :  { %514 = vmatmul.msk.f32.gmra.mxu0 %vm219_vm1, %v700_v23  ;;  %518 = vmatmul.msk.f32.gmra.mxu1 %vm219_vm1, %v729_v39  ;;  %v612_v23 = vceil.f32 %v35_v19  ;;  %v109_v60 = vmul.f32 %v500_v58, %v77_v29  ;;  %v503_v2 = vadd.f32 -1.0, %v61_v22  ;;  %v113_v4 = vmul.f32 %v504_v62, %v81_v61 }
  0x21   :  { %522 = vmatmul.msk.f32.gmra.mxu2 %vm219_vm1, %v31_v54  ;;  %526 = vmatmul.msk.f32.gmra.mxu3 %vm219_vm1, %v35_v19  ;;  %v106_v54 = vmul.f32 %v497_v52, %v74_v51  ;;  %v111_v46 = vmul.f32 %v502_v0, %v79_v63  ;;  %v84_v7 = vmul.f32 0.5, %v65_v34  ;;  %v507_v5 = vadd.f32 -1.0, %v65_v34 }
  0x22   :  { %177 = vperm.xlu2 %619, %v790_v20   ;;  %v614_v36 = vsel %vm611_vm2, %v612_v23, %v613_v32  ;;  %v112_v6 = vmul.f32 %v503_v2, %v80_v1  ;;  %v82_v8 = vmul.f32 0.5, %v790_v20  ;;  %v505_v9 = vadd.f32 -1.0, %v790_v20 }
  0x23   :  { %172 = vperm.xlu1 %618, %v62_v21   ;;  %167 = vperm.xlu0 %617, %v61_v22   ;;  %v615_v39 = vcvt.f32.s32 %v614_v36  ;;  %v83_v11 = vmul.f32 0.5, %v64_v35  ;;  %v506_v12 = vadd.f32 -1.0, %v64_v35  ;;  %v116_v10 = vmul.f32 %v507_v5, %v84_v7 }
  0x24   :  { %v114_v13 = vmul.f32 %v505_v9, %v82_v8  ;;  %v85_v3 = vmul.f32 0.5, %v799_v33  ;;  %v508_v15 = vadd.f32 -1.0, %v799_v33  ;;  %vm473_vm1 = vcmask 261120  }
  0x25   :  { %v67_v43 = vcvt.s32.f32 %v615_v39  ;;  %v115_v14 = vmul.f32 %v506_v12, %v83_v11 }
  0x26   :  { %v117_v19 = vmul.f32 %v508_v15, %v85_v3 }
  0x27   :  { %v86_v17 = vmul.f32 0.5, %v67_v43  ;;  %v509_v18 = vadd.f32 -1.0, %v67_v43 }
  0x29   :  { %v118_v21 = vmul.f32 %v509_v18, %v86_v17 }
  0x2a   :  { %192 = vperm.xlu2 %619, %v799_v33  }
  0x2b   :  { %187 = vperm.xlu1 %618, %v65_v34   ;;  %182 = vperm.xlu0 %617, %v64_v35   ;;  %v837_v34 = vld [vmem:[%s992_s2] ss:$0 sm:$0xff] }
  0x2c   :  { %v842_v35 = vld [vmem:[%s993_s3] ss:$0 sm:$0xff] }
  0x32   :  { %345 = vperm.xlu2 %619, %v104_v42  }
  0x33   :  { %197 = vperm.xlu0 %617, %v67_v43   ;;  %340 = vperm.xlu1 %618, %v103_v44   ;;  %v851_v43 = vld [vmem:[%s994_s4] ss:$0 sm:$0xff] }
  0x3a   :  { %360 = vperm.xlu2 %619, %v107_v53  }
  0x3b   :  { %350 = vperm.xlu0 %617, %v105_v30   ;;  %355 = vperm.xlu1 %618, %v106_v54  }
  0x42   :  { %375 = vperm.xlu2 %619, %v110_v59  }
  0x43   :  { %365 = vperm.xlu0 %617, %v108_v50   ;;  %370 = vperm.xlu1 %618, %v109_v60  }
  0x4a   :  { %390 = vperm.xlu2 %619, %v113_v4  }
  0x4b   :  { %380 = vperm.xlu0 %617, %v111_v46   ;;  %385 = vperm.xlu1 %618, %v112_v6  }
  0x52   :  { %405 = vperm.xlu2 %619, %v116_v10  }
  0x53   :  { %395 = vperm.xlu0 %617, %v114_v13   ;;  %400 = vperm.xlu1 %618, %v115_v14  }
  0x5b   :  { %410 = vperm.xlu0 %617, %v117_v19   ;;  %415 = vperm.xlu1 %618, %v118_v21  }
  0x64   :  { %v143_v22 = vpop.permute.xlu2 %142 }
  0x65   :  { %v207_v49 = vmul.f32 %v837_v34, %v143_v22 }
  0x6c   :  { %v824_v20 = vpop.permute.xlu2 %147 }
  0x74   :  { %v826_v24 = vpop.permute.xlu2 %162 }
  0x7c   :  { %v828_v25 = vpop.permute.xlu2 %177 }
  0x7d   :  { %v830_v26 = vpop.permute.xlu1 %132  ;;  %v123_v16 = vpop.permute.xlu0 %122 }
  0x7e   :  { %v203_v6 = vmul.f32 %v837_v34, %v123_v16  ;;  %v205_v19 = vmul.f32 %v837_v34, %v830_v26 }
  0x84   :  { %v832_v27 = vpop.permute.xlu2 %192 }
  0x85   :  { %v289_v31 = vpop.f32.mrf.mxu0  ;;  %v138_v23 = vpop.permute.xlu1 %137 }
  0x86   :  { %v128_v32 = vpop.permute.xlu0 %127  ;;  %v301_v33 = vpop.f32.mrf.mxu1  ;;  %v290_v12 = vadd.f32 %v289_v31, %v203_v6  ;;  %v206_v21 = vmul.f32 %v837_v34, %v138_v23 }
  0x87   :  { %v204_v36 = vmul.f32 %v837_v34, %v128_v32  ;;  %v302_v52 = vadd.f32 %v301_v33, %v207_v49 }
  0x8c   :  { %v346_v37 = vpop.permute.xlu2 %345  ;;  %v853_v44 = vpop.f32.mrf.mxu2 }
  0x8d   :  { %v292_v38 = vpop.f32.mrf.mxu0  ;;  %v158_v39 = vpop.permute.xlu1 %157  ;;  %v422_v40 = vmul.f32 %v842_v35, %v346_v37 }
  0x8e   :  { %v846_v41 = vpop.permute.xlu0 %152  ;;  %v293_v42 = vadd.f32 %v292_v38, %v204_v36  ;;  %v855_v45 = vpop.f32.mrf.mxu1  ;;  %v210_v58 = vmul.f32 %v837_v34, %v158_v39 }
  0x8f   :  { %v877_v1 = vpop.f32.mrf.mxu3 }
  0x90   :  { %v438_v47 = vadd.f32 %v422_v40, %v293_v42 }
  0x92   :  { %v458_v48 = vadd.f32 %v851_v43, %v438_v47 }
  0x94   :  { %475 = vst.msk [vmem:[%s995_s5 + $0x8] sm:$0xff] %vm473_vm1, %v458_v48  ;;  %v361_v51 = vpop.permute.xlu2 %360  ;;  %v866_v28 = vpop.f32.mrf.mxu2 }
  0x95   :  { %v173_v53 = vpop.permute.xlu1 %172  ;;  %v425_v30 = vmul.f32 %v842_v35, %v361_v51  ;;  %v295_v63 = vpop.f32.mrf.mxu0  ;;  %v208_v51 = vmul.f32 %v837_v34, %v824_v20 }
  0x96   :  { %v864_v54 = vpop.permute.xlu0 %167  ;;  %v307_v55 = vpop.f32.mrf.mxu1  ;;  %v213_v4 = vmul.f32 %v837_v34, %v173_v53  ;;  %v296_v37 = vadd.f32 %v295_v63, %v205_v19  ;;  %v217_v19 = vmul.f32 %v837_v34, %v832_v27 }
  0x97   :  { %v441_v56 = vadd.f32 %v425_v30, %v302_v52  ;;  %v328_v22 = vpop.f32.mrf.mxu3  ;;  %v209_v52 = vmul.f32 %v837_v34, %v846_v41 }
  0x99   :  { %v461_v57 = vadd.f32 %v851_v43, %v441_v56  ;;  %v305_v56 = vadd.f32 %v855_v45, %v208_v51 }
  0x9b   :  { %478 = vst.msk [vmem:[%s995_s5 + $0x20] sm:$0xff] %vm473_vm1, %v461_v57  ;;  %v308_v57 = vadd.f32 %v307_v55, %v209_v52 }
  0x9c   :  { %v376_v29 = vpop.permute.xlu2 %375  ;;  %v319_v2 = vpop.f32.mrf.mxu2 }
  0x9d   :  { %v188_v59 = vpop.permute.xlu1 %187  ;;  %v428_v50 = vmul.f32 %v842_v35, %v376_v29  ;;  %v320_v5 = vadd.f32 %v319_v2, %v213_v4  ;;  %v298_v18 = vpop.f32.mrf.mxu0 }
  0x9e   :  { %v875_v60 = vpop.permute.xlu0 %182  ;;  %v310_v61 = vpop.f32.mrf.mxu1  ;;  %v216_v3 = vmul.f32 %v837_v34, %v188_v59  ;;  %v299_v38 = vadd.f32 %v298_v18, %v206_v21  ;;  %v212_v59 = vmul.f32 %v837_v34, %v864_v54 }
  0x9f   :  { %v311_v62 = vadd.f32 %v310_v61, %v210_v58 }
  0xa0   :  { %v329_v31 = vadd.f32 %v328_v22, %v216_v3  ;;  %v317_v63 = vadd.f32 %v866_v28, %v212_v59 }
  0xa1   :  { %v444_v0 = vadd.f32 %v428_v50, %v311_v62  ;;  %v211_v62 = vmul.f32 %v837_v34, %v826_v24 }
  0xa3   :  { %v464_v46 = vadd.f32 %v851_v43, %v444_v0  ;;  %v314_v54 = vadd.f32 %v853_v44, %v211_v62  ;;  %v214_v44 = vmul.f32 %v837_v34, %v828_v25 }
  0xa4   :  { %v391_v7 = vpop.permute.xlu2 %390 }
  0xa5   :  { %481 = vst.msk [vmem:[%s995_s5 + $0x38] sm:$0xff] %vm473_vm1, %v464_v46  ;;  %v431_v8 = vmul.f32 %v842_v35, %v391_v7  ;;  %v341_v11 = vpop.permute.xlu1 %340  ;;  %v215_v46 = vmul.f32 %v837_v34, %v875_v60 }
  0xa6   :  { %v887_v9 = vpop.permute.xlu0 %197  ;;  %v421_v10 = vmul.f32 %v842_v35, %v341_v11 }
  0xa7   :  { %v447_v13 = vadd.f32 %v431_v8, %v320_v5  ;;  %v331_v5 = vpop.f32.mrf.mxu3  ;;  %v322_v8 = vpop.f32.mrf.mxu2  ;;  %v326_v11 = vadd.f32 %v877_v1, %v215_v46  ;;  %v218_v3 = vmul.f32 %v837_v34, %v887_v9 }
  0xa8   :  { %v437_v14 = vadd.f32 %v421_v10, %v290_v12  ;;  %v323_v12 = vadd.f32 %v322_v8, %v214_v44  ;;  %v332_v21 = vadd.f32 %v331_v5, %v217_v19 }
  0xa9   :  { %v467_v15 = vadd.f32 %v851_v43, %v447_v13 }
  0xaa   :  { %v457_v17 = vadd.f32 %v851_v43, %v437_v14 }
  0xab   :  { %484 = vst.msk [vmem:[%s995_s5 + $0x50] sm:$0xff] %vm473_vm1, %v467_v15 }
  0xac   :  { %474 = vst.msk [vmem:[%s995_s5] sm:$0xff] %vm473_vm1, %v457_v17  ;;  %v406_v16 = vpop.permute.xlu2 %405 }
  0xad   :  { %v434_v32 = vmul.f32 %v842_v35, %v406_v16  ;;  %v356_v36 = vpop.permute.xlu1 %355 }
  0xae   :  { %v351_v33 = vpop.permute.xlu0 %350  ;;  %v424_v26 = vmul.f32 %v842_v35, %v356_v36 }
  0xaf   :  { %v423_v39 = vmul.f32 %v842_v35, %v351_v33  ;;  %v450_v40 = vadd.f32 %v434_v32, %v329_v31  ;;  %v334_v18 = vpop.f32.mrf.mxu3 }
  0xb0   :  { %v440_v42 = vadd.f32 %v424_v26, %v299_v38  ;;  %v335_v22 = vadd.f32 %v334_v18, %v218_v3 }
  0xb1   :  { %v439_v23 = vadd.f32 %v423_v39, %v296_v37  ;;  %v470_v47 = vadd.f32 %v851_v43, %v450_v40 }
  0xb2   :  { %v460_v48 = vadd.f32 %v851_v43, %v440_v42 }
  0xb3   :  { %v459_v49 = vadd.f32 %v851_v43, %v439_v23  ;;  %487 = vst.msk [vmem:[%s995_s5 + $0x68] sm:$0xff] %vm473_vm1, %v470_v47 }
  0xb4   :  { %477 = vst.msk [vmem:[%s995_s5 + $0x18] sm:$0xff] %vm473_vm1, %v460_v48 }
  0xb5   :  { %476 = vst.msk [vmem:[%s995_s5 + $0x10] sm:$0xff] %vm473_vm1, %v459_v49  ;;  %v371_v30 = vpop.permute.xlu1 %370 }
  0xb6   :  { %v366_v53 = vpop.permute.xlu0 %365  ;;  %v427_v29 = vmul.f32 %v842_v35, %v371_v30 }
  0xb7   :  { %v426_v20 = vmul.f32 %v842_v35, %v366_v53 }
  0xb8   :  { %v443_v58 = vadd.f32 %v427_v29, %v308_v57 }
  0xb9   :  { %v442_v41 = vadd.f32 %v426_v20, %v305_v56 }
  0xba   :  { %v463_v61 = vadd.f32 %v851_v43, %v443_v58 }
  0xbb   :  { %v462_v50 = vadd.f32 %v851_v43, %v442_v41 }
  0xbc   :  { %480 = vst.msk [vmem:[%s995_s5 + $0x30] sm:$0xff] %vm473_vm1, %v463_v61 }
  0xbd   :  { %479 = vst.msk [vmem:[%s995_s5 + $0x28] sm:$0xff] %vm473_vm1, %v462_v50  ;;  %v386_v55 = vpop.permute.xlu1 %385 }
  0xbe   :  { %v381_v45 = vpop.permute.xlu0 %380  ;;  %v430_v24 = vmul.f32 %v842_v35, %v386_v55 }
  0xbf   :  { %v429_v0 = vmul.f32 %v842_v35, %v381_v45 }
  0xc0   :  { %v446_v4 = vadd.f32 %v430_v24, %v317_v63 }
  0xc1   :  { %v445_v2 = vadd.f32 %v429_v0, %v314_v54 }
  0xc2   :  { %v466_v7 = vadd.f32 %v851_v43, %v446_v4 }
  0xc3   :  { %v465_v6 = vadd.f32 %v851_v43, %v445_v2 }
  0xc4   :  { %483 = vst.msk [vmem:[%s995_s5 + $0x48] sm:$0xff] %vm473_vm1, %v466_v7 }
  0xc5   :  { %482 = vst.msk [vmem:[%s995_s5 + $0x40] sm:$0xff] %vm473_vm1, %v465_v6  ;;  %v401_v60 = vpop.permute.xlu1 %400 }
  0xc6   :  { %v396_v28 = vpop.permute.xlu0 %395  ;;  %v433_v13 = vmul.f32 %v842_v35, %v401_v60 }
  0xc7   :  { %v432_v10 = vmul.f32 %v842_v35, %v396_v28 }
  0xc8   :  { %v449_v14 = vadd.f32 %v433_v13, %v326_v11 }
  0xc9   :  { %v448_v25 = vadd.f32 %v432_v10, %v323_v12 }
  0xca   :  { %v469_v17 = vadd.f32 %v851_v43, %v449_v14 }
  0xcb   :  { %v468_v15 = vadd.f32 %v851_v43, %v448_v25 }
  0xcc   :  { %486 = vst.msk [vmem:[%s995_s5 + $0x60] sm:$0xff] %vm473_vm1, %v469_v17 }
  0xcd   :  { %485 = vst.msk [vmem:[%s995_s5 + $0x58] sm:$0xff] %vm473_vm1, %v468_v15  ;;  %v416_v9 = vpop.permute.xlu1 %415 }
  0xce   :  { %v411_v1 = vpop.permute.xlu0 %410  ;;  %v436_v31 = vmul.f32 %v842_v35, %v416_v9 }
  0xcf   :  { %v435_v16 = vmul.f32 %v842_v35, %v411_v1 }
  0xd0   :  { %v452_v27 = vadd.f32 %v436_v31, %v335_v22 }
  0xd1   :  { %v451_v32 = vadd.f32 %v435_v16, %v332_v21 }
  0xd2   :  { %v472_v33 = vadd.f32 %v851_v43, %v452_v27 }
  0xd3   :  { %v471_v34 = vadd.f32 %v851_v43, %v451_v32 }
  0xd4   :  { %489 = vst.msk [vmem:[%s995_s5 + $0x78] sm:$0xff] %vm473_vm1, %v472_v33 }
  0xd5   :  { %488 = vst.msk [vmem:[%s995_s5 + $0x70] sm:$0xff] %vm473_vm1, %v471_v34 }

</bundles_post_ra>
